<compile_context>
chip_gen: v6e
topology: v6e:2x2x1
jax: 0.10.0
libtpu: 0.0.40
codegen_flags: <defaults>
</compile_context>

<pallas_src>
import numpy as np
import jax
import jax.numpy as jnp
from jax.experimental import pallas as pl
from jax.experimental.pallas import tpu as pltpu

# ----------------------------- model configuration (synthetic, small) -----------------------------
BATCH = 2
NUM_VERTS = 512            # FLAME has 5023 (padded to 5120 by build_params); small synthetic mesh
NUM_FACES = 1024
NUM_LMKS = 16              # FLAME static embedding has 51; small synthetic set
NUM_JOINTS = 5             # global, neck, jaw, eye_l, eye_r
SHAPE_DIM = 300
EXPR_DIM = 100
N_SHAPE_PARAMS = 10
N_EXPR_PARAMS = 10
PARENTS = np.array([-1, 0, 1, 1, 1], dtype=np.int64)   # FLAME kintree_table[0]
HIGH = jax.lax.Precision.HIGHEST

# ----------------------------------------- Pallas kernel -----------------------------------------

def _lbs_fused_kernel(coef_ref, dirs_ref, vt_ref, w_ref, a_ref, out_ref):
    """Fused blendshapes + linear blend skinning for one (batch, vertex-tile) step.

    coef_ref : (1, 1, C)  f32   [betas_active | pose_feature] for this batch element
    dirs_ref : (3, C, tv) bf16  stacked [shape_active ; posedirs] basis, coordinate-major
    vt_ref   : (3, tv)    f32   template vertices, coordinate-major
    w_ref    : (J, tv)    f32   LBS weights (joints on sublanes, vertices on lanes)
    a_ref    : (1, 12, J) f32   per-joint 3x4 affines, rotation stored column-major,
                                translation column already includes the global 3-D translation
    out_ref  : (1, 3, tv) f32   skinned + translated vertices, coordinate-major
    """
    coef = coef_ref[0].astype(jnp.bfloat16)                              # (1, C)
    # posed template coordinates (shape + expression + pose blendshape offsets)
    px = vt_ref[0:1, :] + jnp.dot(coef, dirs_ref[0], preferred_element_type=jnp.float32)
    py = vt_ref[1:2, :] + jnp.dot(coef, dirs_ref[1], preferred_element_type=jnp.float32)
    pz = vt_ref[2:3, :] + jnp.dot(coef, dirs_ref[2], preferred_element_type=jnp.float32)
    # per-vertex blended affine: rows 0..8 = rotation (column-major), 9..11 = translation
    T = jnp.dot(a_ref[0], w_ref[...], preferred_element_type=jnp.float32)   # (12, tv)
    out_ref[0] = T[0:3] * px + T[3:6] * py + T[6:9] * pz + T[9:12]          # (3, tv)


def lbs_fused_pallas(coef, dirs_cm, vt_cm, w_t, a12):
    """coef:[B,C] f32, dirs_cm:[3,C,Vp] bf16, vt_cm:[3,Vp] f32, w_t:[J,Vp] f32, a12:[B,12,J] f32
    -> vertices_cm [B, 3, Vp] f32."""
    B, C = coef.shape
    _, _, Vp = dirs_cm.shape
    J = w_t.shape[0]
    assert Vp % 128 == 0, "vertex count must be padded to a multiple of 128 at build time"
    lane_tiles = Vp // 128
    for cand in (4, 2, 1):              # a few lane tiles per core -> DMA/compute overlap
        if lane_tiles % cand == 0:
            n_vt = cand
            break
    tv = Vp // n_vt
    coef3 = coef.reshape(B, 1, C)

    return pl.pallas_call(
        _lbs_fused_kernel,
        out_shape=jax.ShapeDtypeStruct((B, 3, Vp), jnp.float32),
        grid_spec=pltpu.PrefetchScalarGridSpec(
            num_scalar_prefetch=0,
            grid=(B, n_vt),
            in_specs=[
                pl.BlockSpec((1, 1, C), lambda b, i: (b, 0, 0)),
                pl.BlockSpec((3, C, tv), lambda b, i: (0, 0, i)),
                pl.BlockSpec((3, tv), lambda b, i: (0, i)),
                pl.BlockSpec((J, tv), lambda b, i: (0, i)),
                pl.BlockSpec((1, 12, J), lambda b, i: (b, 0, 0)),
            ],
            out_specs=pl.BlockSpec((1, 3, tv), lambda b, i: (b, 0, i))),
        compiler_params=pltpu.CompilerParams(
            dimension_semantics=("parallel", "arbitrary")),
    )(coef3, dirs_cm, vt_cm, w_t, a12)


# ---------------------------------------- JAX glue (tiny ops) ----------------------------------------

def batch_rodrigues(rot_vecs, eps=1e-8):
    """Axis-angle [N,3] -> rotation matrices [N,3,3] (same formulation as the PyTorch lbs)."""
    angle = jnp.linalg.norm(rot_vecs + eps, axis=1, keepdims=True)          # [N,1]
    rot_dir = rot_vecs / angle
    cos = jnp.cos(angle)[:, None, :]                                        # [N,1,1]
    sin = jnp.sin(angle)[:, None, :]
    rx, ry, rz = jnp.split(rot_dir, 3, axis=1)
    zeros = jnp.zeros((rot_vecs.shape[0], 1), dtype=rot_vecs.dtype)
    K = jnp.concatenate([zeros, -rz, ry, rz, zeros, -rx, -ry, rx, zeros],
                        axis=1).reshape(-1, 3, 3)
    ident = jnp.eye(3, dtype=rot_vecs.dtype)[None]
    return ident + sin * K + (1.0 - cos) * jnp.matmul(K, K, precision=HIGH)


def batch_rigid_transform(rot_mats, joints, parents):
    """rot_mats [B,N,3,3], joints [B,N,3] -> (posed_joints [B,N,3], rel_transforms [B,N,4,4])."""
    joints = joints[..., None]                                              # [B,N,3,1]
    rel_joints = jnp.concatenate(
        [joints[:, :1], joints[:, 1:] - joints[:, parents[1:]]], axis=1)
    top = jnp.concatenate([rot_mats, rel_joints], axis=-1)                  # [B,N,3,4]
    bottom = jnp.broadcast_to(
        jnp.array([0.0, 0.0, 0.0, 1.0], dtype=rot_mats.dtype),
        top.shape[:-2] + (1, 4))
    transforms_mat = jnp.concatenate([top, bottom], axis=-2)                # [B,N,4,4]

    chain = [transforms_mat[:, 0]]
    for i in range(1, parents.shape[0]):
        chain.append(jnp.matmul(chain[int(parents[i])], transforms_mat[:, i], precision=HIGH))
    transforms = jnp.stack(chain, axis=1)                                   # [B,N,4,4]
    posed_joints = transforms[:, :, :3, 3]

    joints_homogen = jnp.concatenate(
        [joints, jnp.zeros_like(joints[:, :, :1])], axis=2)                 # [B,N,4,1]
    proj = jnp.matmul(transforms, joints_homogen, precision=HIGH)           # [B,N,4,1]
    pad = jnp.concatenate(
        [jnp.zeros(proj.shape[:-1] + (3,), dtype=proj.dtype), proj], axis=-1)
    rel_transforms = transforms - pad
    return posed_joints, rel_transforms


def vertices2landmarks(vertices, faces, lmk_faces_idx, lmk_bary_coords):
    B = vertices.shape[0]
    lmk_faces = faces[lmk_faces_idx.reshape(-1)].reshape(B, -1, 3)          # [B,L,3] vertex ids
    lmk_vertices = vertices[jnp.arange(B)[:, None, None], lmk_faces, :]     # [B,L,3,3]
    return jnp.einsum('blfi,blf->bli', lmk_vertices, lmk_bary_coords, precision=HIGH)


# --------------------------------------- full FLAME forward ---------------------------------------

def flame_forward(params, shape_params, expression_params, pose_params,
                  neck_pose=None, eye_pose=None, transl=None,
                  use_3d_translation=True):
    B = shape_params.shape[0]
    f32 = jnp.float32

    neck_pose = neck_pose if neck_pose is not None else jnp.zeros((B, 3), f32)
    eye_pose = eye_pose if eye_pose is not None else jnp.zeros((B, 6), f32)
    transl = transl if transl is not None else jnp.zeros((B, 3), f32)

    full_pose = jnp.concatenate(
        [pose_params[:, :3], neck_pose, pose_params[:, 3:], eye_pose], axis=1)   # [B, 15]

    # Rodrigues + pose feature (tiny)
    rot_mats = batch_rodrigues(full_pose.reshape(-1, 3)).reshape(B, NUM_JOINTS, 3, 3)
    pose_feature = (rot_mats[:, 1:] - jnp.eye(3, dtype=f32)).reshape(B, -1)      # [B, 36]

    # Only the provided shape/expression coefficients are nonzero (the rest of the 400-dim betas
    # is the module's zero padding), so the kernel streams only the 20 active basis rows +
    # 36 pose basis rows, as one stacked coefficient vector.
    betas_active = jnp.concatenate([shape_params, expression_params], axis=1)    # [B, 20]
    coef = jnp.concatenate([betas_active, pose_feature], axis=1)                 # [B, 56]

    # Joints from the folded regressor (exact: J_regressor @ (v_template + betas @ shapedirs)).
    J = params['J_template'][None] + jnp.einsum(
        'bk,kjc->bjc', betas_active, params['J_shapedirs'], precision=HIGH)      # [B, Nj, 3]

    # kinematic chain (tiny)
    _, A = batch_rigid_transform(rot_mats, J, PARENTS)                           # [B, Nj, 4, 4]

    # Per-joint 3x4 affines, rotation column-major, translation column carries the global 3-D
    # translation (exact: LBS weights sum to 1, barycentric weights sum to 1).
    transl_eff = transl if use_3d_translation else jnp.zeros((B, 3), f32)
    R = A[:, :, :3, :3]                                                          # [B, Nj, 3, 3]
    t = A[:, :, :3, 3] + transl_eff[:, None, :]                                  # [B, Nj, 3]
    a12 = jnp.concatenate(
        [jnp.transpose(R, (0, 3, 2, 1)).reshape(B, 9, NUM_JOINTS),               # row 3*c + r = R[r,c]
         jnp.transpose(t, (0, 2, 1))], axis=1)                                   # rows 9..11 = t[r]

    # --- single fused Pallas kernel: blendshapes + LBS + translation, coordinate-major output ---
    vertices_cm = lbs_fused_pallas(coef, params['dirs_cm'], params['v_template_cm'],
                                   params['lbs_weights_t'], a12)                 # [B, 3, Vp]
    vertices = jnp.transpose(vertices_cm[:, :, :NUM_VERTS], (0, 2, 1))           # [B, V, 3]

    # landmarks (barycentric gather, tiny)
    lmk_faces_idx_batch = jnp.broadcast_to(params['lmk_faces_idx'][None], (B, NUM_LMKS))
    lmk_bary_batch = jnp.broadcast_to(params['lmk_bary_coords'][None], (B, NUM_LMKS, 3))
    landmarks = vertices2landmarks(vertices, params['faces'], lmk_faces_idx_batch, lmk_bary_batch)
    return vertices, landmarks


# --------------------------------- deterministic synthetic parameters ---------------------------------

def build_params(key):
    keys = jax.random.split(key, 12)
    v_template = jax.random.normal(keys[0], (NUM_VERTS, 3), jnp.float32) * 0.1
    shapedirs = jax.random.normal(keys[1], (NUM_VERTS, 3, SHAPE_DIM + EXPR_DIM), jnp.float32) * 0.01
    posedirs = jax.random.normal(keys[2], (NUM_VERTS, 3, 9 * (NUM_JOINTS - 1)), jnp.float32) * 0.01
    J_regressor = jax.nn.softmax(jax.random.normal(keys[3], (NUM_JOINTS, NUM_VERTS), jnp.float32), axis=1)
    lbs_weights = jax.nn.softmax(jax.random.normal(keys[4], (NUM_VERTS, NUM_JOINTS), jnp.float32), axis=1)
    faces = jax.random.randint(keys[5], (NUM_FACES, 3), 0, NUM_VERTS, dtype=jnp.int32)
    lmk_faces_idx = jax.random.randint(keys[6], (NUM_LMKS,), 0, NUM_FACES, dtype=jnp.int32)
    lmk_bary_coords = jax.nn.softmax(jax.random.normal(keys[7], (NUM_LMKS, 3), jnp.float32), axis=1)

    n_s, n_e = N_SHAPE_PARAMS, N_EXPR_PARAMS
    # active shape + expression basis rows, then the 36 pose basis rows -> one stacked basis
    shape_active = jnp.concatenate(
        [shapedirs[..., :n_s], shapedirs[..., SHAPE_DIM:SHAPE_DIM + n_e]], axis=-1)   # [V, 3, 20]
    dirs_full = jnp.concatenate([shape_active, posedirs], axis=-1)                    # [V, 3, 56]

    # Fold the joint regressor into the (active) shape basis: tiny, exact.
    J_template = jnp.einsum('jv,vc->jc', J_regressor, v_template, precision=HIGH)     # [Nj, 3]
    J_shapedirs = jnp.einsum('jv,vck->kjc', J_regressor, shape_active, precision=HIGH)  # [20, Nj, 3]

    # Coordinate-major, 128-padded layouts so the fused kernel is lane-dense with unmasked stores.
    V_pad = ((NUM_VERTS + 127) // 128) * 128
    pad_v = V_pad - NUM_VERTS
    dirs_cm = jnp.transpose(dirs_full, (1, 2, 0))          # [3, 56, V]
    vt_cm = v_template.T                                    # [3, V]
    w_t = lbs_weights.T                                     # [Nj, V]
    if pad_v:
        dirs_cm = jnp.pad(dirs_cm, ((0, 0), (0, 0), (0, pad_v)))
        vt_cm = jnp.pad(vt_cm, ((0, 0), (0, pad_v)))
        w_t = jnp.pad(w_t, ((0, 0), (0, pad_v)))

    params = {
        'dirs_cm': dirs_cm.astype(jnp.bfloat16),            # [3, 56, Vp] bf16 (dominant HBM stream)
        'v_template_cm': vt_cm,                              # [3, Vp]
        'lbs_weights_t': w_t,                                # [Nj, Vp]
        'J_template': J_template,                            # [Nj, 3]
        'J_shapedirs': J_shapedirs,                          # [20, Nj, 3]
        'faces': faces,
        'lmk_faces_idx': lmk_faces_idx,
        'lmk_bary_coords': lmk_bary_coords,
    }
    return params, keys[8:]


if __name__ == "__main__":
    key = jax.random.PRNGKey(0)
    params, ikeys = build_params(key)

    shape_params = jax.random.normal(ikeys[0], (BATCH, N_SHAPE_PARAMS), jnp.float32) * 0.5
    expression_params = jax.random.normal(ikeys[1], (BATCH, N_EXPR_PARAMS), jnp.float32) * 0.5
    pose_params = jax.random.normal(ikeys[2], (BATCH, 6), jnp.float32) * 0.1
    transl = jax.random.normal(ikeys[3], (BATCH, 3), jnp.float32) * 0.05

    vertices, landmarks = jax.jit(
        lambda s, e, p, t: flame_forward(params, s, e, p, transl=t)
    )(shape_params, expression_params, pose_params, transl)

    jax.block_until_ready((vertices, landmarks))
    assert vertices.shape == (BATCH, NUM_VERTS, 3)
    assert landmarks.shape == (BATCH, NUM_LMKS, 3)
    assert bool(jnp.all(jnp.isfinite(vertices))) and bool(jnp.all(jnp.isfinite(landmarks)))
    print("KERNEL_OK")
</pallas_src>

<mosaic_0001>
module attributes {stable_mosaic.version = 11 : i64} {
  func.func @_lbs_fused_kernel(%arg0: i32, %arg1: i32, %arg2: memref<1x1x56xf32, #tpu.memory_space<vmem>>, %arg3: memref<3x56x128xbf16, #tpu.memory_space<vmem>>, %arg4: memref<3x128xf32, #tpu.memory_space<vmem>>, %arg5: memref<5x128xf32, #tpu.memory_space<vmem>>, %arg6: memref<1x12x5xf32, #tpu.memory_space<vmem>>, %arg7: memref<1x3x128xf32, #tpu.memory_space<vmem>>) attributes {dimension_semantics = [#tpu.dimension_semantics<parallel>, #tpu.dimension_semantics<arbitrary>], iteration_bounds = array<i64: 2, 4>, scalar_prefetch = 0 : i64, scratch_operands = 0 : i64, tpu.core_type = #tpu.core_type<tc>, window_params = [{transform_indices = @transform_0, window_bounds = array<i64: 1, 1, 56>}, {transform_indices = @transform_1, window_bounds = array<i64: 3, 56, 128>}, {transform_indices = @transform_2, window_bounds = array<i64: 3, 128>}, {transform_indices = @transform_3, window_bounds = array<i64: 5, 128>}, {transform_indices = @transform_4, window_bounds = array<i64: 1, 12, 5>}, {transform_indices = @transform_5, window_bounds = array<i64: 1, 3, 128>}]} {
    %c0 = arith.constant 0 : index
    %c0_0 = arith.constant 0 : index
    %c0_1 = arith.constant 0 : index
    %0 = vector.load %arg2[%c0, %c0_0, %c0_1] : memref<1x1x56xf32, #tpu.memory_space<vmem>>, vector<1x1x56xf32>
    %1 = vector.shape_cast %0 : vector<1x1x56xf32> to vector<1x56xf32>
    %2 = arith.truncf %1 : vector<1x56xf32> to vector<1x56xbf16>
    %c0_2 = arith.constant 0 : index
    %c0_3 = arith.constant 0 : index
    %3 = vector.load %arg4[%c0_2, %c0_3] : memref<3x128xf32, #tpu.memory_space<vmem>>, vector<1x128xf32>
    %c0_4 = arith.constant 0 : index
    %c0_5 = arith.constant 0 : index
    %c0_6 = arith.constant 0 : index
    %4 = vector.load %arg3[%c0_4, %c0_5, %c0_6] : memref<3x56x128xbf16, #tpu.memory_space<vmem>>, vector<1x56x128xbf16>
    %5 = vector.shape_cast %4 : vector<1x56x128xbf16> to vector<56x128xbf16>
    %cst = arith.constant dense<0.000000e+00> : vector<1x128xf32>
    %6 = tpu.matmul %2, %5, %cst {dimension_numbers = #tpu.dot_dimension_numbers<[1], [0], [0], [1], [0, 0, 1, 1], [], []>} : vector<1x56xbf16>, vector<56x128xbf16>, vector<1x128xf32> -> vector<1x128xf32>
    %7 = arith.addf %3, %6 : vector<1x128xf32>
    %c1 = arith.constant 1 : index
    %c0_7 = arith.constant 0 : index
    %8 = vector.load %arg4[%c1, %c0_7] : memref<3x128xf32, #tpu.memory_space<vmem>>, vector<1x128xf32>
    %c1_8 = arith.constant 1 : index
    %c0_9 = arith.constant 0 : index
    %c0_10 = arith.constant 0 : index
    %9 = vector.load %arg3[%c1_8, %c0_9, %c0_10] : memref<3x56x128xbf16, #tpu.memory_space<vmem>>, vector<1x56x128xbf16>
    %10 = vector.shape_cast %9 : vector<1x56x128xbf16> to vector<56x128xbf16>
    %cst_11 = arith.constant dense<0.000000e+00> : vector<1x128xf32>
    %11 = tpu.matmul %2, %10, %cst_11 {dimension_numbers = #tpu.dot_dimension_numbers<[1], [0], [0], [1], [0, 0, 1, 1], [], []>} : vector<1x56xbf16>, vector<56x128xbf16>, vector<1x128xf32> -> vector<1x128xf32>
    %12 = arith.addf %8, %11 : vector<1x128xf32>
    %c2 = arith.constant 2 : index
    %c0_12 = arith.constant 0 : index
    %13 = vector.load %arg4[%c2, %c0_12] : memref<3x128xf32, #tpu.memory_space<vmem>>, vector<1x128xf32>
    %c2_13 = arith.constant 2 : index
    %c0_14 = arith.constant 0 : index
    %c0_15 = arith.constant 0 : index
    %14 = vector.load %arg3[%c2_13, %c0_14, %c0_15] : memref<3x56x128xbf16, #tpu.memory_space<vmem>>, vector<1x56x128xbf16>
    %15 = vector.shape_cast %14 : vector<1x56x128xbf16> to vector<56x128xbf16>
    %cst_16 = arith.constant dense<0.000000e+00> : vector<1x128xf32>
    %16 = tpu.matmul %2, %15, %cst_16 {dimension_numbers = #tpu.dot_dimension_numbers<[1], [0], [0], [1], [0, 0, 1, 1], [], []>} : vector<1x56xbf16>, vector<56x128xbf16>, vector<1x128xf32> -> vector<1x128xf32>
    %17 = arith.addf %13, %16 : vector<1x128xf32>
    %c0_17 = arith.constant 0 : index
    %c0_18 = arith.constant 0 : index
    %c0_19 = arith.constant 0 : index
    %18 = vector.load %arg6[%c0_17, %c0_18, %c0_19] : memref<1x12x5xf32, #tpu.memory_space<vmem>>, vector<1x12x5xf32>
    %19 = vector.shape_cast %18 : vector<1x12x5xf32> to vector<12x5xf32>
    %c0_20 = arith.constant 0 : index
    %c0_21 = arith.constant 0 : index
    %20 = vector.load %arg5[%c0_20, %c0_21] : memref<5x128xf32, #tpu.memory_space<vmem>>, vector<5x128xf32>
    %cst_22 = arith.constant dense<0.000000e+00> : vector<12x128xf32>
    %21 = tpu.matmul %19, %20, %cst_22 {dimension_numbers = #tpu.dot_dimension_numbers<[1], [0], [0], [1], [0, 0, 1, 1], [], []>} : vector<12x5xf32>, vector<5x128xf32>, vector<12x128xf32> -> vector<12x128xf32>
    %22 = vector.extract_strided_slice %21 {offsets = [0, 0], sizes = [3, 128], strides = [1, 1]} : vector<12x128xf32> to vector<3x128xf32>
    %23 = vector.broadcast %7 : vector<1x128xf32> to vector<3x128xf32>
    %24 = arith.mulf %22, %23 : vector<3x128xf32>
    %25 = vector.extract_strided_slice %21 {offsets = [3, 0], sizes = [3, 128], strides = [1, 1]} : vector<12x128xf32> to vector<3x128xf32>
    %26 = vector.broadcast %12 : vector<1x128xf32> to vector<3x128xf32>
    %27 = arith.mulf %25, %26 : vector<3x128xf32>
    %28 = arith.addf %24, %27 : vector<3x128xf32>
    %29 = vector.extract_strided_slice %21 {offsets = [6, 0], sizes = [3, 128], strides = [1, 1]} : vector<12x128xf32> to vector<3x128xf32>
    %30 = vector.broadcast %17 : vector<1x128xf32> to vector<3x128xf32>
    %31 = arith.mulf %29, %30 : vector<3x128xf32>
    %32 = arith.addf %28, %31 : vector<3x128xf32>
    %33 = vector.extract_strided_slice %21 {offsets = [9, 0], sizes = [3, 128], strides = [1, 1]} : vector<12x128xf32> to vector<3x128xf32>
    %34 = arith.addf %32, %33 : vector<3x128xf32>
    %c0_23 = arith.constant 0 : index
    %c0_24 = arith.constant 0 : index
    %c0_25 = arith.constant 0 : index
    %35 = vector.load %arg7[%c0_23, %c0_24, %c0_25] : memref<1x3x128xf32, #tpu.memory_space<vmem>>, vector<1x3x128xf32>
    %36 = vector.shape_cast %35 : vector<1x3x128xf32> to vector<3x128xf32>
    %37 = vector.shape_cast %34 : vector<3x128xf32> to vector<1x3x128xf32>
    tpu.vector_store %arg7[%c0_23, %c0_24, %c0_25], %37 {strides = array<i32>} : memref<1x3x128xf32, #tpu.memory_space<vmem>>, vector<1x3x128xf32>,
    return
  }
  func.func @transform_0(%arg0: i32, %arg1: i32) -> (i32, i32, i32) {
    %c0_i32 = arith.constant 0 : i32
    %c0_i32_0 = arith.constant 0 : i32
    %c0_i32_1 = arith.constant 0 : i32
    return %arg0, %c0_i32, %c0_i32_0 : i32, i32, i32
  }
  func.func @transform_1(%arg0: i32, %arg1: i32) -> (i32, i32, i32) {
    %c0_i32 = arith.constant 0 : i32
    %c0_i32_0 = arith.constant 0 : i32
    %c0_i32_1 = arith.constant 0 : i32
    return %c0_i32, %c0_i32_0, %arg1 : i32, i32, i32
  }
  func.func @transform_2(%arg0: i32, %arg1: i32) -> (i32, i32) {
    %c0_i32 = arith.constant 0 : i32
    %c0_i32_0 = arith.constant 0 : i32
    return %c0_i32, %arg1 : i32, i32
  }
  func.func @transform_3(%arg0: i32, %arg1: i32) -> (i32, i32) {
    %c0_i32 = arith.constant 0 : i32
    %c0_i32_0 = arith.constant 0 : i32
    return %c0_i32, %arg1 : i32, i32
  }
  func.func @transform_4(%arg0: i32, %arg1: i32) -> (i32, i32, i32) {
    %c0_i32 = arith.constant 0 : i32
    %c0_i32_0 = arith.constant 0 : i32
    %c0_i32_1 = arith.constant 0 : i32
    return %arg0, %c0_i32, %c0_i32_0 : i32, i32, i32
  }
  func.func @transform_5(%arg0: i32, %arg1: i32) -> (i32, i32, i32) {
    %c0_i32 = arith.constant 0 : i32
    %c0_i32_0 = arith.constant 0 : i32
    return %arg0, %c0_i32, %arg1 : i32, i32, i32
  }
}

</mosaic_0001>

<bundles_post_ra>
// kernel: _lambda_.1
= control target key start
LH: loop header
LB: loop body
LE: loop exit
PB: predicated region body
PF: predicated region fallthrough
CT: control target
= control target key end

     0   :  { %s1184_s18 = smov 0   ;;  %s1186_s19 = smov 0   ;;  %s1381_s0 = inlined_call_operand.vmem [shape: f32[2,1,56], index: 0, kind: input, shape index: {}]   ;;  %s1382_s1 = inlined_call_operand.vmem [shape: bf16[3,56,512], index: 1, kind: input, shape index: {}]   ;;  %s1383_s2 = inlined_call_operand.vmem [shape: f32[3,512], index: 2, kind: input, shape index: {}]   ;;  %s1384_s3 = inlined_call_operand.vmem [shape: f32[5,512], index: 3, kind: input, shape index: {}]   ;;  %s1385_s4 = inlined_call_operand.vmem [shape: f32[2,12,5], index: 4, kind: input, shape index: {}]   ;;  %s1386_s5 = inlined_call_operand.vmem [shape: f32[2,3,512], index: 5, kind: output, shape index: {}]  }
   0x1   :  { %s1188_s20 = smov 0   ;;  %s1190_s21 = smov 0  }
   0x2   :  { %s1192_s22 = smov 0   ;;  %s1194_s23 = smov 0  }
   0x3   :  { %s1196_s24 = smov 0  }
   0x4 LB: > { %s24_s25 = sadd.s32 1, %s1142_s22  ;;  %s27_s26 = sadd.s32 1, %s1146_s23  ;;  %s1150_s24 = sphi %s1196_s24, %s15_s24   ;;  %s1146_s23 = sphi %s1194_s23, %s1392_s23   ;;  %s1142_s22 = sphi %s1192_s22, %s1391_s22   ;;  %s1138_s21 = sphi %s1190_s21, %s1390_s21   ;;  %s1134_s20 = sphi %s1188_s20, %s1389_s20   ;;  %s1130_s19 = sphi %s1186_s19, %s1388_s19   ;;  %s1126_s18 = sphi %s1184_s18, %s1387_s18  }
   0x5   : > { %p25_p0 = scmp.ge.s32.totalorder %s24_s25, 4  ;;  %s60_s27 = sadd.s32 1, %s1130_s19 }
   0x6   : > { %p67_p1 = scmp.ne.s32.totalorder %s1130_s19, %s1126_s18  ;;  %p68_p2 = scmp.eq.s32.totalorder %s1150_s24, 0 }
   0x7   : > { %s1394_s25 = smov (%p25_p0, %s24_s25), 0  ;;  %s1396_s26 = smov (!%p25_p0, %s27_s26), %s1146_s23 }
   0x8   : > { %s57_s28 = ssub.s32 %s1142_s22, %s1394_s25  ;;  %p69_p3 = por %p68_p2, %p67_p1 }
   0x9   : > { %p29_p4 = scmp.ge.s32.totalorder %s1396_s26, 2  ;;  %p58_p5 = scmp.eq.s32.totalorder %s57_s28, 0 }
   0xa   : > { %p921_p6 = scmp.ge.s32.totalorder %s1150_s24, 8 }
   0xb   : > { %s1398_s26 = smov (%p29_p4, %s1396_s26), 0 }
   0xc   : > { %s1233_s29 = scalar_select %p58_p5, %s1130_s19, %s60_s27  }
   0xd   : > { %199 = sbr.rel (%p921_p6) target bundleno = 36 (0x24), region = 16 }
  0x12   : > { %208 = sbr.rel (!%p69_p3) target bundleno = 36 (0x24), region = 24  ;;  %s210_s30 = sand.u32 (%p69_p3), 1, %s1130_s19  }
  0x13   : > { %s922_s6 = sshll.u32 (%p69_p3), %s1142_s22, 2  ;;  %s1024_s7 = smul.u32 (%p69_p3), 84, %s210_s30 }
  0x14   : > { %s1241_s10 = scalar_lea.vmem (%p69_p3), %s1382_s1, %s922_s6 }
  0x15   : > { %v231_v0 = vld [vmem:[%s1241_s10] sm:$0xf] (%p69_p3)  ;;  %v233_v1 = vld [vmem:[%s1241_s10 + $0x10] sm:$0xf] (%p69_p3)  ;;  %s1248_s11 = scalar_lea.vmem (%p69_p3), [#allocation2], %s1024_s7 }
  0x16   : > { %v235_v2 = vld [vmem:[%s1241_s10 + $0x20] sm:$0xf] (%p69_p3)  ;;  %v237_v3 = vld [vmem:[%s1241_s10 + $0x30] sm:$0xf] (%p69_p3)  ;;  %232 = vst [vmem:[%s1248_s11] sm:$0xf] (%p69_p3), %v231_v0 }
  0x17   : > { %v239_v4 = vld [vmem:[%s1241_s10 + $0x40] sm:$0xf]  ;;  %234 = vst [vmem:[%s1248_s11 + $0x4] sm:$0xf] %v233_v1  ;;  %236 = vst [vmem:[%s1248_s11 + $0x8] sm:$0xf] %v235_v2 }
  0x18   : > { %238 = vst [vmem:[%s1248_s11 + $0xc] sm:$0xf] %v237_v3  ;;  %240 = vst [vmem:[%s1248_s11 + $0x10] sm:$0xf] %v239_v4  ;;  %v241_v5 = vld [vmem:[%s1241_s10 + $0x50] sm:$0xf] }
  0x19   : > { %v243_v6 = vld [vmem:[%s1241_s10 + $0x60] sm:$0xf]  ;;  %v245_v7 = vld [vmem:[%s1241_s10 + $0x70] sm:$0xf]  ;;  %242 = vst [vmem:[%s1248_s11 + $0x14] sm:$0xf] %v241_v5 }
  0x1a   : > { %244 = vst [vmem:[%s1248_s11 + $0x18] sm:$0xf] %v243_v6  ;;  %246 = vst [vmem:[%s1248_s11 + $0x1c] sm:$0xf] %v245_v7  ;;  %v247_v8 = vld [vmem:[%s1241_s10 + $0x80] sm:$0xf] }
  0x1b   : > { %v249_v9 = vld [vmem:[%s1241_s10 + $0x90] sm:$0xf]  ;;  %v251_v10 = vld [vmem:[%s1241_s10 + $0xa0] sm:$0xf]  ;;  %248 = vst [vmem:[%s1248_s11 + $0x20] sm:$0xf] %v247_v8 }
  0x1c   : > { %250 = vst [vmem:[%s1248_s11 + $0x24] sm:$0xf] %v249_v9  ;;  %252 = vst [vmem:[%s1248_s11 + $0x28] sm:$0xf] %v251_v10  ;;  %v253_v11 = vld [vmem:[%s1241_s10 + $0xb0] sm:$0xf] }
  0x1d   : > { %v255_v12 = vld [vmem:[%s1241_s10 + $0xc0] sm:$0xf]  ;;  %v257_v13 = vld [vmem:[%s1241_s10 + $0xd0] sm:$0xf]  ;;  %254 = vst [vmem:[%s1248_s11 + $0x2c] sm:$0xf] %v253_v11 }
  0x1e   : > { %256 = vst [vmem:[%s1248_s11 + $0x30] sm:$0xf] %v255_v12  ;;  %258 = vst [vmem:[%s1248_s11 + $0x34] sm:$0xf] %v257_v13  ;;  %v259_v14 = vld [vmem:[%s1241_s10 + $0xe0] sm:$0xf] }
  0x1f   : > { %v261_v15 = vld [vmem:[%s1241_s10 + $0xf0] sm:$0xf]  ;;  %v263_v16 = vld [vmem:[%s1241_s10 + $0x100] sm:$0xf]  ;;  %260 = vst [vmem:[%s1248_s11 + $0x38] sm:$0xf] %v259_v14 }
  0x20   : > { %262 = vst [vmem:[%s1248_s11 + $0x3c] sm:$0xf] %v261_v15  ;;  %264 = vst [vmem:[%s1248_s11 + $0x40] sm:$0xf] %v263_v16  ;;  %v265_v17 = vld [vmem:[%s1241_s10 + $0x110] sm:$0xf] }
  0x21   : > { %v267_v18 = vld [vmem:[%s1241_s10 + $0x120] sm:$0xf]  ;;  %v269_v19 = vld [vmem:[%s1241_s10 + $0x130] sm:$0xf]  ;;  %266 = vst [vmem:[%s1248_s11 + $0x44] sm:$0xf] %v265_v17 }
  0x22   : > { %268 = vst [vmem:[%s1248_s11 + $0x48] sm:$0xf] %v267_v18  ;;  %270 = vst [vmem:[%s1248_s11 + $0x4c] sm:$0xf] %v269_v19  ;;  %v271_v20 = vld [vmem:[%s1241_s10 + $0x140] sm:$0xf] }
  0x23   : > { %272 = vst [vmem:[%s1248_s11 + $0x50] sm:$0xf] %v271_v20 }
  0x24 PF: > { %p923_p7 = scmp.ge.s32.totalorder %s1150_s24, 1  ;;  %p359_p8 = scmp.lt.s32.totalorder %s1150_s24, 9 }
  0x26   : > { %p360_p9 = pnand %p923_p7, %p359_p8 }
  0x27   : > { %s366_s12 = sand.u32 (!%p360_p9), 1, %s1126_s18   ;;  %p412_p10 = scmp.lt.s32.totalorder (!%p360_p9), %s1138_s21, 1 }
  0x28   : > { %363 = sbr.rel (%p360_p9) target bundleno = 286 (0x11e), region = 77  ;;  %p415_p11 = scmp.lt.s32.totalorder (!%p360_p9), %s1134_s20, 3 }
  0x29   : > { %s1025_s13 = smul.u32 (!%p360_p9), 84, %s366_s12 }
  0x2b   : > { %s1298_s14 = scalar_lea.vmem (!%p360_p9), [#allocation2], %s1025_s13 }
  0x2d   : > { %v1152_v21 = vmov 0.0   ;;  %vm1153_vm0 = vmmov 0   ;;  %vm472_vm1 = vcmask 1043456   ;;  %v1084_v22 = vld [vmem:[%s1298_s14 + $0x18] ss:$0 sps:$4 sm:$0xff]   ;;  %s1400_s21 = smov (!%p412_p10, %s1138_s21), 1  ;;  %v754_v44 = vlaneseq }
  0x2e   : > { %983 = vmatprep.subr.bf16.mxu0 %v1152_v21  ;;  %995 = vmatprep.subr.bf16.mxu1 %v1152_v21  ;;  %v1085_v23 = vld [vmem:[%s1298_s14 + $0x34] ss:$0 sps:$4 sm:$0xff]   ;;  %v474_v24 = vsel %vm472_vm1, %v1084_v22, 0  ;;  %v1087_v27 = vld [vmem:[%s1298_s14 + $0x2c] sm:$0xff]   ;;  %s1402_s20 = smov (!%p415_p11, %s1134_s20), 3  ;;  %s928_s15 = sshll.u32 %s1400_s21, 2 }
  0x2f   : > { %991 = vmatprep.mubr.msk.bf16.mxu0 %vm1153_vm0, %v1152_v21  ;;  %1003 = vmatprep.mubr.msk.bf16.mxu1 %vm1153_vm0, %v1152_v21  ;;  %v548_v25 = vsel %vm472_vm1, %v1085_v23, 0  ;;  %v1086_v26 = vld [vmem:[%s1298_s14 + $0x10] sm:$0xff]   ;;  %s1316_s16 = sadd.s32 %s928_s15, %s1402_s20  ;;  %v1088_v28 = vld [vmem:[%s1298_s14 + $0x8] sm:$0xff]   ;;  %s414_s27 = scalar_lea.vmem %s1381_s0, %s1400_s21  ;;  %v1090_v30 = vld [vmem:[%s1298_s14] sm:$0xff]   ;;  %vm675_vm2 = vcmask 1044480   ;;  %vm468_vm3 = vcmask 457728  }
  0x30   : > { %984 = vmatpush3.bf16.msra.mxu0 %v474_v24  ;;  %996 = vmatpush3.bf16.msra.mxu1 %v548_v25  ;;  %v1089_v29 = vld [vmem:[%s1298_s14 + $0x24] sm:$0xff]   ;;  %s925_s28 = sshll.u32 %s1402_s20, 3  ;;  %v437_v31 = vld [vmem:[%s414_s27] sm:$0x1]  ;;  %v1092_v33 = vld [vmem:[%s1298_s14 + $0x50] ss:$0 sps:$4 sm:$0xff]  }
  0x31   : > { %985 = vmatprep.subr.bf16.mxu0 %v1152_v21  ;;  %997 = vmatprep.subr.bf16.mxu1 %v1152_v21  ;;  %s422_s7 = scalar_lea.vmem %s1384_s3, %s925_s28  ;;  %v1091_v32 = vld [vmem:[%s1298_s14 + $0x1c] sm:$0xff]   ;;  %s964_s8 = sshll.u32 %s1400_s21, 4  ;;  %v438_v34 = vpack.c.bf16 %v437_v31, %v437_v31  ;;  %v622_v36 = vsel %vm472_vm1, %v1092_v33, 0  ;;  %vm668_vm4 = vcmask 39936   ;;  %v1093_v38 = vld [vmem:[%s1298_s14 + $0x48] sm:$0xff]   ;;  %v755_v50 = vshrl.u32 %v754_v44, 7 }
  0x32   : > { %v667_v35 = vld [vmem:[%s422_s7] sm:$0x1f]  ;;  %s427_s11 = scalar_lea.vmem %s1385_s4, %s964_s8  ;;  %v1095_v41 = vld [vmem:[%s1298_s14 + $0x38] sm:$0xff]   ;;  %s924_s21 = sshll.u32 %s1402_s20, 2  ;;  %vm776_vm5 = vcmask 1041408  }
  0x33   : > { %v665_v37 = vld [vmem:[%s427_s11] sm:$0xff]  ;;  %v666_v40 = vld [vmem:[%s427_s11 + $0x8] sm:$0xf]  ;;  %s418_s15 = scalar_lea.vmem %s1383_s2, %s924_s21  ;;  %v756_v55 = vsub.s32 0, %v755_v50  ;;  %s929_s20 = sshll.u32 %s1316_s16, 2 }
  0x34   : > { %986 = vmatpush3.bf16.msra.mxu0 %v1086_v26  ;;  %998 = vmatpush3.bf16.msra.mxu1 %v1087_v27  ;;  %v1094_v39 = vld [vmem:[%s1298_s14 + $0x40] sm:$0xff]   ;;  %s435_s18 = scalar_lea.vmem %s1386_s5, %s929_s20 }
  0x35   : > { %987 = vmatprep.subr.bf16.mxu0 %v1152_v21  ;;  %999 = vmatprep.subr.bf16.mxu1 %v1152_v21  ;;  %v517_v48 = vld [vmem:[%s418_s15 + $0x1] sm:$0x1]  ;;  %v439_v57 = vld [vmem:[%s418_s15] sm:$0x1]  ;;  %v591_v59 = vld [vmem:[%s418_s15 + $0x2] sm:$0x1] }
  0x38   : > { %988 = vmatpush3.bf16.msra.mxu0 %v1088_v28  ;;  %1000 = vmatpush3.bf16.msra.mxu1 %v1089_v29 }
  0x39   : > { %989 = vmatprep.subr.bf16.mxu0 %v1152_v21  ;;  %1001 = vmatprep.subr.bf16.mxu1 %v1152_v21 }
  0x3c   : > { %990 = vmatpush3.bf16.msra.mxu0 %v1090_v30  ;;  %1002 = vmatpush3.bf16.msra.mxu1 %v1091_v32 }
  0x3d   : > { %1007 = vmatprep.subr.bf16.mxu0 %v1152_v21  ;;  %1019 = vmatprep.subr.msk.mxu1 %vm675_vm2, %v667_v35 }
  0x3f   : > { %992 = vmatmul.mubr.msk.bf16.vlgmr.msra.gmra.mxu0 %vm468_vm3, %v438_v34  ;;  %1004 = vmatmul.mubr.msk.bf16.vlgmr.msra.gmra.mxu1 %vm468_vm3, %v438_v34 }
  0x40   : > { %1008 = vmatpush3.bf16.msra.mxu0 %v622_v36  ;;  %1020 = vmatpush3.msk.msra.mxu1 %vm675_vm2, %v667_v35 }
  0x41   : > { %1009 = vmatprep.subr.bf16.mxu0 %v1152_v21  ;;  %1021 = vmatprep.mubr.msk.f32.mxu1 %vm668_vm4, %v665_v37 }
  0x42   : > { %1015 = vmatprep.mubr.msk.bf16.mxu0 %vm1153_vm0, %v1152_v21 }
  0x44   : > { %1010 = vmatpush3.bf16.msra.mxu0 %v1093_v38 }
  0x45   : > { %1011 = vmatprep.subr.bf16.mxu0 %v1152_v21 }
  0x47   : > { %1022 = vmatmul.mubr.msk.f32.vlgmr.msra.gmra.mxu1 %vm668_vm4, %v666_v40 }
  0x48   : > { %1012 = vmatpush3.bf16.msra.mxu0 %v1094_v39 }
  0x49   : > { %1013 = vmatprep.subr.bf16.mxu0 %v1152_v21 }
  0x4c   : > { %1014 = vmatpush3.bf16.msra.mxu0 %v1095_v41 }
  0x4f   : > { %1016 = vmatmul.mubr.msk.bf16.vlgmr.msra.gmra.mxu0 %vm468_vm3, %v438_v34 }
  0xff   : > { %v510_v42 = vpop.f32.mrf.mxu0  ;;  %v584_v43 = vpop.f32.mrf.mxu1 }
 0x100   : > { %v590_v53 = vadd.f32 %v584_v43, %v517_v48  ;;  %v516_v60 = vadd.f32 %v510_v42, %v439_v57 }
 0x101   : > { %v993_v45 = vpop.f32.mrf.mxu0  ;;  %v1005_v46 = vpop.f32.mrf.mxu1 }
 0x102   : > { %v762_v56 = vrot.slane %v590_v53, %v756_v55  ;;  %v757_v2 = vrot.slane %v516_v60, %v756_v55 }
 0x103   : > { %v513_v47 = vpop.f32.mrf.mxu0  ;;  %v587_v49 = vpop.f32.mrf.mxu1 }
 0x105   : > { %v994_v51 = vpop.f32.mrf.mxu0  ;;  %v1006_v52 = vpop.f32.mrf.mxu1 }
 0x107   : > { %v1023_v54 = vpop.f32.mrf.mxu1 }
 0x108   : > { %v783_v13 = vrot.slane %v1023_v54, 1 }
 0x109   : > { %v745_v58 = vpop.f32.mrf.mxu1 }
 0x10a   : > { %v763_v61 = vmul.f32 %v762_v56, %v745_v58  ;;  %v758_v7 = vmul.f32 %v757_v2, %v745_v58 }
 0x10c   : > { %v765_v3 = vrot.slane %v763_v61, 3 }
 0x10e   : > { %v767_v11 = vadd.f32 %v765_v3, %v758_v7 }
 0x10f   : > { %v658_v62 = vpop.f32.mrf.mxu0 }
 0x110   : > { %v664_v63 = vadd.f32 %v658_v62, %v591_v59 }
 0x111   : > { %v1017_v0 = vpop.f32.mrf.mxu0 }
 0x112   : > { %v771_v1 = vrot.slane %v664_v63, %v756_v55 }
 0x113   : > { %v661_v4 = vpop.f32.mrf.mxu0 }
 0x114   : > { %v772_v5 = vmul.f32 %v771_v1, %v745_v58  ;;  %v773_v6 = vmul.f32 %v1023_v54, %v771_v1 }
 0x115   : > { %v1018_v8 = vpop.f32.mrf.mxu0 }
 0x116   : > { %v777_v9 = vrot.slane %v772_v5, 6  ;;  %v778_v10 = vrot.slane %v773_v6, 6 }
 0x118   : > { %v779_v12 = vsel %vm776_vm5, %v777_v9, %v778_v10 }
 0x119   : > { %v781_v14 = vadd.f32 %v779_v12, %v767_v11 }
 0x11b   : > { %v785_v15 = vadd.f32 %v783_v13, %v781_v14 }
 0x11d   : > { %786 = vst [vmem:[%s435_s18] sm:$0x7] %v785_v15 }
 0x11e PF: > { %s15_s24 = sadd.s32 1, %s1150_s24   ;;  %s1387_s18 = smov %s1130_s19 }
 0x11f   : > { %p12_p12 = scmp.ge.s32.totalorder %s15_s24, 10   ;;  %s1388_s19 = smov %s1233_s29 }
 0x120   : > { %s1389_s20 = smov %s1142_s22  ;;  %s1390_s21 = smov %s1146_s23 }
 0x121   : > { %s1391_s22 = smov %s1394_s25  ;;  %s1392_s23 = smov %s1398_s26 }
 0x122   :  { %14 = sbr.rel (!%p12_p12) target bundleno = 4 (0x4), region = 130 }

</bundles_post_ra>
